<compile_context>
chip_gen: v7x
topology: tpu7x:2x2x1
jax: 0.10.0
libtpu: 0.0.40
codegen_flags: <defaults>
</compile_context>

<pallas_src>
import jax
import jax.numpy as jnp
from jax.experimental import pallas as pl
from jax.experimental.pallas import tpu as pltpu

DROPOUT_RATE = 0.5          # identity in eval/inference mode
HIDDEN_SIZE = 64
NUM_AXES = 3
NUM_SENSORS = 8
INPUT_SIZE = NUM_SENSORS * NUM_AXES   # 24

LANE = 128                  # TPU lane width; logits padded to a multiple of this


def _mlp_kernel(x_ref, w1_ref, b1_ref, w2_ref, b2_ref, o_ref):
    """One batch tile: logits = relu(X @ W1 + b1) @ W2 + b2.

    x_ref : (TM, 24)     bf16
    w1_ref: (24, 64)     bf16   (resident across grid steps)
    b1_ref: (1, 64)      f32
    w2_ref: (64, C_pad)  bf16   (C_pad multiple of 128, zero-padded columns)
    b2_ref: (1, C_pad)   f32
    o_ref : (TM, C_pad)  f32
    """
    h = jnp.dot(x_ref[...], w1_ref[...],
                preferred_element_type=jnp.float32) + b1_ref[...]   # (TM, 64) f32
    h = jnp.maximum(h, 0.0)                  # ReLU in f32 (v5e-safe elementwise)
    # TODO(synk): nn.Dropout(0.5) is identity in eval mode; a training-mode
    # kernel would use pltpu.prng_seed + pltpu.stateful_bernoulli here.
    out = jnp.dot(h.astype(jnp.bfloat16), w2_ref[...],
                  preferred_element_type=jnp.float32) + b2_ref[...]  # (TM, C_pad)
    o_ref[...] = out.astype(o_ref.dtype)


def keypress_classifier_forward(x, w1, b1, w2, b2, *, tile_m=8192):
    """x: (B, 1, NUM_SENSORS, NUM_AXES) float32 -> logits (B, num_classes) f32."""
    B = x.shape[0]
    num_classes = w2.shape[1]
    c_pad = ((num_classes + LANE - 1) // LANE) * LANE

    # Flatten like torch's .view(B, -1); stream X / weights as bf16.
    x2d = x.reshape(B, -1).astype(jnp.bfloat16)
    w1b = w1.astype(jnp.bfloat16)
    b1f = b1.reshape(1, HIDDEN_SIZE).astype(jnp.float32)
    # Zero-pad logit columns to a lane-dense width (sliced off below).
    w2b = jnp.zeros((HIDDEN_SIZE, c_pad), jnp.bfloat16)
    w2b = w2b.at[:, :num_classes].set(w2.astype(jnp.bfloat16))
    b2f = jnp.zeros((1, c_pad), jnp.float32)
    b2f = b2f.at[:, :num_classes].set(b2.reshape(1, num_classes).astype(jnp.float32))

    if B <= tile_m:
        # Latency fast path: whole problem is a single block / single grid step.
        tm, b_pad, x_in = B, B, x2d
    else:
        tm = tile_m
        b_pad = pl.cdiv(B, tm) * tm
        x_in = jnp.pad(x2d, ((0, b_pad - B), (0, 0))) if b_pad != B else x2d

    grid = (b_pad // tm,)
    resident = lambda i: (0, 0)          # weights/biases: same block every step

    out = pl.pallas_call(
        _mlp_kernel,
        out_shape=jax.ShapeDtypeStruct((b_pad, c_pad), jnp.float32),
        grid=grid,
        in_specs=[
            pl.BlockSpec((tm, INPUT_SIZE), lambda i: (i, 0)),       # X: streamed
            pl.BlockSpec((INPUT_SIZE, HIDDEN_SIZE), resident),      # W1
            pl.BlockSpec((1, HIDDEN_SIZE), resident),               # b1
            pl.BlockSpec((HIDDEN_SIZE, c_pad), resident),           # W2 (padded)
            pl.BlockSpec((1, c_pad), resident),                     # b2 (padded)
        ],
        out_specs=pl.BlockSpec((tm, c_pad), lambda i: (i, 0)),
        compiler_params=pltpu.CompilerParams(
            dimension_semantics=("parallel",),   # shard batch over v7x's 2 TCs
        ),
    )(x_in, w1b, b1f, w2b, b2f)

    return out[:B, :num_classes]


def init_params(key, num_classes):
    """Deterministic synthetic parameters (shapes match the nn.Linear layers)."""
    k1, k2, k3, k4 = jax.random.split(key, 4)
    # torch Linear weight is (out, in); we keep (in, out) for the kernel.
    bound1 = 1.0 / (INPUT_SIZE ** 0.5)
    w1 = jax.random.uniform(k1, (INPUT_SIZE, HIDDEN_SIZE),
                            minval=-bound1, maxval=bound1, dtype=jnp.float32)
    b1 = jax.random.uniform(k2, (1, HIDDEN_SIZE),
                            minval=-bound1, maxval=bound1, dtype=jnp.float32)
    bound2 = 1.0 / (HIDDEN_SIZE ** 0.5)
    w2 = jax.random.uniform(k3, (HIDDEN_SIZE, num_classes),
                            minval=-bound2, maxval=bound2, dtype=jnp.float32)
    b2 = jax.random.uniform(k4, (1, num_classes),
                            minval=-bound2, maxval=bound2, dtype=jnp.float32)
    return w1, b1, w2, b2


if __name__ == "__main__":
    key = jax.random.PRNGKey(0)
    kx, kp = jax.random.split(key)

    num_classes = 10
    w1, b1, w2, b2 = init_params(kp, num_classes)

    def ref_forward(xin):
        x2d = xin.reshape(xin.shape[0], -1)
        h = jnp.maximum(x2d @ w1 + b1, 0.0)
        return h @ w2 + b2

    # 1) Small-batch latency path (single grid step), module-consistent shape.
    batch = 2
    x_small = jax.random.normal(kx, (batch, 1, NUM_SENSORS, NUM_AXES),
                                dtype=jnp.float32)
    logits_small = jax.block_until_ready(
        keypress_classifier_forward(x_small, w1, b1, w2, b2))
    assert logits_small.shape == (batch, num_classes)
    assert jnp.allclose(logits_small, ref_forward(x_small), atol=2e-2, rtol=2e-2)

    # 2) Gridded / padded throughput path (non-divisible batch, small tile to
    #    force multiple grid steps).
    big = 1000
    x_big = jax.random.normal(kx, (big, 1, NUM_SENSORS, NUM_AXES),
                              dtype=jnp.float32)
    logits_big = jax.block_until_ready(
        keypress_classifier_forward(x_big, w1, b1, w2, b2, tile_m=256))
    assert logits_big.shape == (big, num_classes)
    assert jnp.allclose(logits_big, ref_forward(x_big), atol=2e-2, rtol=2e-2)

    print("KERNEL_OK")
</pallas_src>

<mosaic_0001>
module attributes {stable_mosaic.version = 11 : i64} {
  func.func @_mlp_kernel(%arg0: i32, %arg1: memref<2x24xbf16, #tpu.memory_space<vmem>>, %arg2: memref<24x64xbf16, #tpu.memory_space<vmem>>, %arg3: memref<1x64xf32, #tpu.memory_space<vmem>>, %arg4: memref<64x128xbf16, #tpu.memory_space<vmem>>, %arg5: memref<1x128xf32, #tpu.memory_space<vmem>>, %arg6: memref<2x128xf32, #tpu.memory_space<vmem>>) attributes {dimension_semantics = [#tpu.dimension_semantics<parallel>], iteration_bounds = array<i64: 1>, scalar_prefetch = 0 : i64, scratch_operands = 0 : i64, tpu.core_type = #tpu.core_type<tc>, window_params = [{transform_indices = @transform_0, window_bounds = array<i64: 2, 24>}, {pipeline_mode = #tpu.pipeline_mode<synchronous>, transform_indices = @transform_1, window_bounds = array<i64: 24, 64>}, {pipeline_mode = #tpu.pipeline_mode<synchronous>, transform_indices = @transform_2, window_bounds = array<i64: 1, 64>}, {pipeline_mode = #tpu.pipeline_mode<synchronous>, transform_indices = @transform_3, window_bounds = array<i64: 64, 128>}, {pipeline_mode = #tpu.pipeline_mode<synchronous>, transform_indices = @transform_4, window_bounds = array<i64: 1, 128>}, {transform_indices = @transform_5, window_bounds = array<i64: 2, 128>}]} {
    %c0 = arith.constant 0 : index
    %c0_0 = arith.constant 0 : index
    %0 = vector.load %arg1[%c0, %c0_0] : memref<2x24xbf16, #tpu.memory_space<vmem>>, vector<2x24xbf16>
    %c0_1 = arith.constant 0 : index
    %c0_2 = arith.constant 0 : index
    %1 = vector.load %arg2[%c0_1, %c0_2] : memref<24x64xbf16, #tpu.memory_space<vmem>>, vector<24x64xbf16>
    %cst = arith.constant dense<0.000000e+00> : vector<2x64xf32>
    %2 = tpu.matmul %0, %1, %cst {dimension_numbers = #tpu.dot_dimension_numbers<[1], [0], [0], [1], [0, 0, 1, 1], [], []>} : vector<2x24xbf16>, vector<24x64xbf16>, vector<2x64xf32> -> vector<2x64xf32>
    %c0_3 = arith.constant 0 : index
    %c0_4 = arith.constant 0 : index
    %3 = vector.load %arg3[%c0_3, %c0_4] : memref<1x64xf32, #tpu.memory_space<vmem>>, vector<1x64xf32>
    %4 = vector.broadcast %3 : vector<1x64xf32> to vector<2x64xf32>
    %5 = arith.addf %2, %4 : vector<2x64xf32>
    %cst_5 = arith.constant 0.000000e+00 : f32
    %6 = vector.broadcast %cst_5 : f32 to vector<2x64xf32>
    %7 = arith.maximumf %5, %6 : vector<2x64xf32>
    %8 = arith.truncf %7 : vector<2x64xf32> to vector<2x64xbf16>
    %c0_6 = arith.constant 0 : index
    %c0_7 = arith.constant 0 : index
    %9 = vector.load %arg4[%c0_6, %c0_7] : memref<64x128xbf16, #tpu.memory_space<vmem>>, vector<64x128xbf16>
    %cst_8 = arith.constant dense<0.000000e+00> : vector<2x128xf32>
    %10 = tpu.matmul %8, %9, %cst_8 {dimension_numbers = #tpu.dot_dimension_numbers<[1], [0], [0], [1], [0, 0, 1, 1], [], []>} : vector<2x64xbf16>, vector<64x128xbf16>, vector<2x128xf32> -> vector<2x128xf32>
    %c0_9 = arith.constant 0 : index
    %c0_10 = arith.constant 0 : index
    %11 = vector.load %arg5[%c0_9, %c0_10] : memref<1x128xf32, #tpu.memory_space<vmem>>, vector<1x128xf32>
    %12 = vector.broadcast %11 : vector<1x128xf32> to vector<2x128xf32>
    %13 = arith.addf %10, %12 : vector<2x128xf32>
    %c0_11 = arith.constant 0 : index
    %c0_12 = arith.constant 0 : index
    %14 = vector.load %arg6[%c0_11, %c0_12] : memref<2x128xf32, #tpu.memory_space<vmem>>, vector<2x128xf32>
    tpu.vector_store %arg6[%c0_11, %c0_12], %13 {strides = array<i32>} : memref<2x128xf32, #tpu.memory_space<vmem>>, vector<2x128xf32>,
    return
  }
  func.func @transform_0(%arg0: i32) -> (i32, i32) {
    %c0_i32 = arith.constant 0 : i32
    %c0_i32_0 = arith.constant 0 : i32
    return %arg0, %c0_i32 : i32, i32
  }
  func.func @transform_1(%arg0: i32) -> (i32, i32) {
    %c0_i32 = arith.constant 0 : i32
    %c0_i32_0 = arith.constant 0 : i32
    %c0_i32_1 = arith.constant 0 : i32
    return %c0_i32, %c0_i32_0 : i32, i32
  }
  func.func @transform_2(%arg0: i32) -> (i32, i32) {
    %c0_i32 = arith.constant 0 : i32
    %c0_i32_0 = arith.constant 0 : i32
    %c0_i32_1 = arith.constant 0 : i32
    return %c0_i32, %c0_i32_0 : i32, i32
  }
  func.func @transform_3(%arg0: i32) -> (i32, i32) {
    %c0_i32 = arith.constant 0 : i32
    %c0_i32_0 = arith.constant 0 : i32
    %c0_i32_1 = arith.constant 0 : i32
    return %c0_i32, %c0_i32_0 : i32, i32
  }
  func.func @transform_4(%arg0: i32) -> (i32, i32) {
    %c0_i32 = arith.constant 0 : i32
    %c0_i32_0 = arith.constant 0 : i32
    %c0_i32_1 = arith.constant 0 : i32
    return %c0_i32, %c0_i32_0 : i32, i32
  }
  func.func @transform_5(%arg0: i32) -> (i32, i32) {
    %c0_i32 = arith.constant 0 : i32
    %c0_i32_0 = arith.constant 0 : i32
    return %arg0, %c0_i32 : i32, i32
  }
}

</mosaic_0001>

<bundles_post_ra>
// kernel: tpu_custom_call.1
= control target key start
LH: loop header
LB: loop body
LE: loop exit
PB: predicated region body
PF: predicated region fallthrough
CT: control target
= control target key end

     0   :  { %10 = vsyncpa [#allocation3], 0  ;;  %s475_s0 = inlined_call_operand.hbm [shape: bf16[2,24], index: 0, kind: input, shape index: {}]   ;;  %s476_s1 = inlined_call_operand.hbm [shape: bf16[24,64], index: 1, kind: input, shape index: {}]   ;;  %s477_s2 = inlined_call_operand.vmem [shape: f32[1,64], index: 2, kind: input, shape index: {}]   ;;  %s478_s3 = inlined_call_operand.hbm [shape: bf16[64,128], index: 3, kind: input, shape index: {}]   ;;  %s479_s4 = inlined_call_operand.vmem [shape: f32[1,128], index: 4, kind: input, shape index: {}]   ;;  %s480_s5 = inlined_call_operand.hbm [shape: f32[2,128], index: 5, kind: output, shape index: {}]  }
   0x1   :  { %11 = vsyncpa [#allocation6], 0 }
   0x2   :  { %12 = vsyncpa [#allocation4], 0  ;;  %s377_s18 = smov [#allocation5]   ;;  %s283_s22 = scalar_lea.hbm %s476_s1, 192 }
   0x3   :  { %s28_s19 = sshll.u32 %s377_s18, 4  ;;  %p284_p0 = scmp.ne.s32.totalorder %s476_s1, %s283_s22  ;;  %s29_s19 = int_to_ptr.vmem [resolvable:$true] %s28_s19 }
   0x4   :  { %p287_p1 = scmp.lt.u32.totalorder %s283_s22, %s476_s1 }
   0x6   :  { %p289_p2 = pnand %p287_p1, %p284_p0 }
   0x8   :  { %292 = shalt.err (!%p289_p2)
}
   0x9   :  { %s293_s27 = scalar_lea.vmem %s29_s19, 192  ;;  %p298_p4 = scmp.lt.s32.totalorder %s29_s19, %s29_s19 }
   0xa   :  { %p294_p3 = scmp.ne.s32.totalorder %s29_s19, %s293_s27  ;;  %p299_p5 = scmp.lt.s32.totalorder %s293_s27, %s293_s27 }
   0xc   :  { %p300_p6 = por %p299_p5, %p298_p4 }
   0xe   :  { %p301_p7 = pnand %p300_p6, %p294_p3 }
  0x10   :  { %304 = shalt.err (!%p301_p7)
}
  0x11   :  { %s378_s28 = smov 64   ;;  %s379_s29 = smov 4  }
  0x12   :  { %34 = dma.hbm_to_vmem [thread:$0]  %s476_s1, 192, %s29_s19, [#allocation6], %s378_s28, %s378_s28, %s379_s29  }
  0x13   :  { %s380_s7 = smov [#allocation2]   ;;  %s381_s9 = smov [#allocation7]  }
  0x14   :  { %s19_s8 = sshll.u32 %s380_s7, 4  ;;  %s42_s10 = sshll.u32 %s381_s9, 4  ;;  %s20_s8 = int_to_ptr.vmem [resolvable:$true] %s19_s8  ;;  %s43_s10 = int_to_ptr.vmem [resolvable:$true] %s42_s10 }
  0x15   :  { %s305_s13 = scalar_lea.hbm %s475_s0, 16 }
  0x16   :  { %p306_p8 = scmp.ne.s32.totalorder %s475_s0, %s305_s13  ;;  %p309_p9 = scmp.lt.u32.totalorder %s305_s13, %s475_s0 }
  0x18   :  { %p311_p10 = pnand %p309_p9, %p306_p8 }
  0x1a   :  { %314 = shalt.err (!%p311_p10)
}
  0x1b   :  { %s315_s1 = scalar_lea.vmem %s20_s8, 16  ;;  %s319_s18 = scalar_lea.vmem %s20_s8, 32 }
  0x1c   :  { %p316_p11 = scmp.ne.s32.totalorder %s20_s8, %s315_s1  ;;  %p320_p12 = scmp.lt.s32.totalorder %s20_s8, %s20_s8 }
  0x1d   :  { %p321_p13 = scmp.lt.s32.totalorder %s319_s18, %s315_s1 }
  0x1f   :  { %p322_p0 = por %p321_p13, %p320_p12 }
  0x21   :  { %p323_p1 = pnand %p322_p0, %p316_p11 }
  0x23   :  { %326 = shalt.err (!%p323_p1)
}
  0x24   :  { %22 = dma.hbm_to_vmem [thread:$0]  %s475_s0, 16, %s20_s8, [#allocation3]  }
  0x25   :  { %s327_s23 = scalar_lea.hbm %s478_s3, 512 }
  0x26   :  { %p328_p2 = scmp.ne.s32.totalorder %s478_s3, %s327_s23  ;;  %p331_p3 = scmp.lt.u32.totalorder %s327_s23, %s478_s3 }
  0x28   :  { %p333_p4 = pnand %p331_p3, %p328_p2 }
  0x2a   :  { %336 = shalt.err (!%p333_p4)
}
  0x2b   :  { %s337_s30 = scalar_lea.vmem %s43_s10, 512  ;;  %p342_p6 = scmp.lt.s32.totalorder %s43_s10, %s43_s10 }
  0x2c   :  { %p338_p5 = scmp.ne.s32.totalorder %s43_s10, %s337_s30  ;;  %p343_p7 = scmp.lt.s32.totalorder %s337_s30, %s337_s30 }
  0x2e   :  { %p344_p8 = por %p343_p7, %p342_p6 }
  0x30   :  { %p345_p9 = pnand %p344_p8, %p338_p5 }
  0x32   :  { %348 = shalt.err (!%p345_p9)
}
  0x33   :  { %48 = dma.hbm_to_vmem [thread:$0]  %s478_s3, 512, %s43_s10, [#allocation6], %s378_s28, %s378_s28, %s379_s29  }
  0x34   :  { %371 = dma.done.wait [#allocation3], 16  }
  0x35   :  { %372 = vsyncadd [#allocation3], 4294967280 }
  0x36   :  { %373 = dma.done.wait [#allocation6], 704  }
  0x37   :  { %374 = vsyncadd [#allocation6], 4294966592  ;;  %v382_v0 = vmov 0.0   ;;  %vm383_vm0 = vmmov 0   ;;  %v277_v1 = vld [vmem:[#allocation5] sm:$0xff]   ;;  %vm85_vm1 = vcmask 1043456  }
  0x38   :  { %249 = vmatprep.subr.bf16.mxu0 %v382_v0  ;;  %253 = vmatprep.mubr.msk.bf16.mxu0 %vm383_vm0, %v382_v0  ;;  %v278_v2 = vld [vmem:[#allocation5 + $0x8] ss:$0 sps:$4 sm:$0xff]   ;;  %v279_v3 = vld [vmem:[#allocation7] sm:$0xff]   ;;  %v280_v5 = vld [vmem:[#allocation7 + $0x8] sm:$0xff]   ;;  %vm81_vm2 = vcmask 195584   ;;  %vm170_vm3 = vcmask 523264  }
  0x39   :  { %257 = vmatprep.subr.bf16.mxu1 %v382_v0  ;;  %265 = vmatprep.mubr.msk.bf16.mxu1 %vm383_vm0, %v382_v0  ;;  %v87_v4 = vsel %vm85_vm1, %v278_v2, 0  ;;  %v61_v6 = vld [vmem:[#allocation2] sm:$0x1]  ;;  %v282_v8 = vld [vmem:[#allocation7 + $0x18] sm:$0xff]   ;;  %s384_s8 = smov [#allocation8]  }
  0x3a   :  { %250 = vmatpush3.bf16.msra.mxu0 %v277_v1  ;;  %258 = vmatpush3.bf16.msra.mxu1 %v279_v3  ;;  %v281_v7 = vld [vmem:[#allocation7 + $0x10] sm:$0xff]   ;;  %s221_s9 = sshll.u32 %s384_s8, 4  ;;  %s222_s9 = int_to_ptr.vmem [resolvable:$true] %s221_s9 }
  0x3b   :  { %251 = vmatprep.subr.bf16.mxu0 %v382_v0  ;;  %259 = vmatprep.subr.bf16.mxu1 %v382_v0  ;;  %v231_v9 = vld [vmem:[%s477_s2] ss:$0 sm:$0xff]  ;;  %s349_s2 = scalar_lea.vmem %s222_s9, 32  ;;  %p354_p11 = scmp.lt.s32.totalorder %s222_s9, %s222_s9 }
  0x3c   :  { %v235_v17 = vld [vmem:[%s479_s4] ss:$0 sm:$0xff]  ;;  %p350_p10 = scmp.ne.s32.totalorder %s222_s9, %s349_s2  ;;  %p355_p12 = scmp.lt.s32.totalorder %s349_s2, %s349_s2 }
  0x3e   :  { %252 = vmatpush3.bf16.msra.mxu0 %v87_v4  ;;  %260 = vmatpush3.bf16.msra.mxu1 %v280_v5  ;;  %p356_p13 = por %p355_p12, %p354_p11 }
  0x3f   :  { %261 = vmatprep.subr.bf16.mxu1 %v382_v0 }
  0x40   :  { %p357_p0 = pnand %p356_p13, %p350_p10 }
  0x41   :  { %254 = vmatmul.mubr.msk.bf16.vlgmr.msra.gmra.mrb[0].mxu0 %vm81_vm2, %v61_v6 }
  0x42   :  { %262 = vmatpush3.bf16.msra.mxu1 %v281_v7 }
  0x43   :  { %263 = vmatprep.subr.bf16.mxu1 %v382_v0 }
  0x46   :  { %264 = vmatpush3.bf16.msra.mxu1 %v282_v8 }
 0x114   :  { %v123_v10 = vpop.f32.mrb[0].mxu0 }
 0x115   :  { %v124_v11 = vadd.f32 %v231_v9, %v123_v10  ;;  %v255_v12 = vpop.f32.mrb[1].mxu0 }
 0x116   :  { %v126_v13 = vpop.f32.mrb[2].mxu0 }
 0x117   :  { %v129_v14 = vmax.f32 %v124_v11, 0.0  ;;  %v256_v15 = vpop.f32.mrb[3].mxu0 }
 0x119   :  { %v130_v16 = vpack.c.bf16 %v129_v14, %v129_v14 }
 0x11b   :  { %266 = vmatmul.mubr.msk.bf16.vlgmr.msra.gmra.mrb[0].mxu1 %vm170_vm3, %v130_v16 }
 0x1ee   :  { %v208_v18 = vpop.f32.mrb[0].mxu1 }
 0x1ef   :  { %v209_v19 = vadd.f32 %v235_v17, %v208_v18  ;;  %v267_v20 = vpop.f32.mrb[1].mxu1 }
 0x1f0   :  { %v211_v21 = vpop.f32.mrb[2].mxu1 }
 0x1f1   :  { %214 = vst [vmem:[#allocation8] sm:$0x3] %v209_v19  ;;  %v268_v22 = vpop.f32.mrb[3].mxu1 }
 0x1f2   :  { %360 = shalt.err (!%p357_p0)
}
 0x1f3   :  { %s361_s4 = scalar_lea.hbm %s480_s5, 32 }
 0x1f4   :  { %p362_p1 = scmp.ne.s32.totalorder %s480_s5, %s361_s4  ;;  %p365_p2 = scmp.lt.u32.totalorder %s361_s4, %s480_s5 }
 0x1f6   :  { %p367_p3 = pnand %p365_p2, %p362_p1 }
 0x1f8   :  { %370 = shalt.err (!%p367_p3)
}
 0x1f9   :  { %224 = dma.vmem_to_hbm [thread:$0]  %s222_s9, 32, %s480_s5, [#allocation4]  }
 0x1fa   :  { %375 = dma.done.wait [#allocation4], 32  }
 0x1fb   :  { %376 = vsyncadd [#allocation4], 4294967264 }
 0x1fc   :  { %228 = vsyncpa [#allocation3], 1 }
 0x1fd   :  { %229 = vsyncpa [#allocation6], 1 }
 0x1fe   :  { %230 = vsyncpa [#allocation4], 1 }

</bundles_post_ra>
